<compile_context>
chip_gen: v6e
topology: v6e:2x2x1
jax: 0.10.0
libtpu: 0.0.40
codegen_flags: <defaults>
</compile_context>

<pallas_src>
import functools

import jax
import jax.numpy as jnp
from jax.experimental import pallas as pl
from jax.experimental.pallas import tpu as pltpu


def _round_up(a, b):
    return (a + b - 1) // b * b


def _pick_vmem_limit_bytes():
    # ~75% of physical VMEM (v5e/v6e: 128 MiB -> 96 MiB; v7x: 64 MiB -> 48 MiB),
    # capped at 100 MiB.
    try:
        cap = pltpu.get_tpu_info().vmem_capacity_bytes
    except Exception:  # conservative fallback if the query is unavailable
        cap = 64 * 1024 * 1024
    return int(min(cap * 3 // 4, 100 * 1024 * 1024))


def _ffn_ln_kernel(x_ref, w1_ref, b1_ref, w2_ref, b2_ref, g_ref, beta_ref,
                   o_ref, *, eps):
    # x_ref: (tm, D)   w1_ref: (D, F)   w2_ref: (F, D)   rest: (1, F)/(1, D)
    x = x_ref[...]                                    # native dtype -> MXU

    # w1: pointwise conv (k=1) == matmul; f32 accumulation, bias + ReLU in f32.
    h = jnp.dot(x, w1_ref[...], preferred_element_type=jnp.float32)
    h = jnp.maximum(h + b1_ref[...].astype(jnp.float32), 0.0)

    # w2: pointwise conv (k=1); feed the MXU in the weights' native dtype.
    # TODO(synk): for very large F on v7x (64 MiB VMEM), tile F here (chunk h,
    # consume each chunk immediately in the second matmul) instead of keeping
    # the full (tm, F) activation and both whole weights resident.
    y = jnp.dot(h.astype(w2_ref.dtype), w2_ref[...],
                preferred_element_type=jnp.float32)
    y = y + b2_ref[...].astype(jnp.float32)

    # TODO(synk): dropout has p=0.0 in the module default -> identity here.

    # residual + LayerNorm over model_dim (last axis), biased variance
    # (PyTorch semantics); epilogue kept in f32 on every chip generation.
    r = x.astype(jnp.float32) + y
    mean = jnp.mean(r, axis=-1, keepdims=True)
    cen = r - mean
    var = jnp.mean(cen * cen, axis=-1, keepdims=True)
    norm = cen * jax.lax.rsqrt(var + eps)
    o_ref[...] = (norm * g_ref[...].astype(jnp.float32)
                  + beta_ref[...].astype(jnp.float32)).astype(o_ref.dtype)


def positional_wise_feed_forward(x, w1, b1, w2, b2, gamma, beta,
                                 *, eps=1e-5, tm=256):
    """x: (B, S, D);  w1: (D, F);  w2: (F, D);  b1: (F,);  b2,gamma,beta: (D,)."""
    B, S, D = x.shape
    F = w1.shape[1]
    M = B * S

    # Row tile: big enough to feed the MXU (128/256-high slabs) but no larger
    # than the sublane-rounded row count; pad rows so the grid divides evenly.
    tm_eff = min(tm, _round_up(M, 8))
    M_pad = _round_up(M, tm_eff)

    x2 = x.reshape(M, D)
    if M_pad != M:
        x2 = jnp.pad(x2, ((0, M_pad - M), (0, 0)))

    b1_2 = b1.reshape(1, F)
    b2_2 = b2.reshape(1, D)
    g2 = gamma.reshape(1, D)
    be2 = beta.reshape(1, D)

    # Grid-invariant operands (weights / biases / LN params) are mapped whole
    # into VMEM: one resident copy, no per-grid-step double-buffered DMA.
    resident = pl.BlockSpec(memory_space=pltpu.MemorySpace.VMEM)

    # NOTE: for production shapes keep D a multiple of 128 (lane width) so the
    # (tm, D) output block issues unmasked, lane-dense stores.
    out = pl.pallas_call(
        functools.partial(_ffn_ln_kernel, eps=eps),
        out_shape=jax.ShapeDtypeStruct((M_pad, D), x.dtype),
        grid_spec=pltpu.PrefetchScalarGridSpec(
            num_scalar_prefetch=0,
            grid=(M_pad // tm_eff,),
            in_specs=[
                pl.BlockSpec((tm_eff, D), lambda i: (i, 0)),   # x rows (streamed)
                resident,                                      # w1 (D, F)
                resident,                                      # b1 (1, F)
                resident,                                      # w2 (F, D)
                resident,                                      # b2 (1, D)
                resident,                                      # gamma (1, D)
                resident,                                      # beta  (1, D)
            ],
            out_specs=pl.BlockSpec((tm_eff, D), lambda i: (i, 0)),
        ),
        compiler_params=pltpu.CompilerParams(
            # Row axis is embarrassingly parallel -> sharded across the two
            # TensorCores on v7x; harmless on single-TC v5e/v6e.
            dimension_semantics=("parallel",),
            vmem_limit_bytes=_pick_vmem_limit_bytes(),
        ),
    )(x2, w1, b1_2, w2, b2_2, g2, be2)
    return out[:M].reshape(B, S, D)


def _reference(x, w1, b1, w2, b2, gamma, beta, eps=1e-5):
    h = jnp.maximum(jnp.einsum("bsd,df->bsf", x, w1) + b1, 0.0)
    y = jnp.einsum("bsf,fd->bsd", h, w2) + b2
    r = x + y
    mean = jnp.mean(r, axis=-1, keepdims=True)
    var = jnp.mean((r - mean) ** 2, axis=-1, keepdims=True)
    return (r - mean) / jnp.sqrt(var + eps) * gamma + beta


if __name__ == "__main__":
    B, S, D, FF = 2, 8, 32, 64   # batch, seq, model_dim, ffn_dim

    key = jax.random.PRNGKey(0)
    kx, k1, k2, k3, k4 = jax.random.split(key, 5)

    x = jax.random.normal(kx, (B, S, D), dtype=jnp.float32)

    # Conv1d(model_dim, ffn_dim, 1).weight has shape (ffn_dim, model_dim, 1);
    # we store its transpose (model_dim, ffn_dim) so the kernel does x @ w1.
    w1 = jax.random.normal(k1, (D, FF), dtype=jnp.float32) * (1.0 / jnp.sqrt(D))
    b1 = jax.random.normal(k2, (FF,), dtype=jnp.float32) * 0.01
    w2 = jax.random.normal(k3, (FF, D), dtype=jnp.float32) * (1.0 / jnp.sqrt(FF))
    b2 = jax.random.normal(k4, (D,), dtype=jnp.float32) * 0.01
    gamma = jnp.ones((D,), dtype=jnp.float32)
    beta = jnp.zeros((D,), dtype=jnp.float32)

    out = positional_wise_feed_forward(x, w1, b1, w2, b2, gamma, beta)
    out = jax.block_until_ready(out)

    ref = _reference(x, w1, b1, w2, b2, gamma, beta)
    assert out.shape == (B, S, D)
    assert jnp.allclose(out, ref, atol=1e-4, rtol=1e-4)

    # Ragged row count (B*S not a multiple of the tile / of 8) exercises the
    # padding path that replaced the old `assert M % tm == 0`.
    Br, Sr = 3, 5
    xr = jax.random.normal(jax.random.PRNGKey(1), (Br, Sr, D), dtype=jnp.float32)
    outr = jax.block_until_ready(
        positional_wise_feed_forward(xr, w1, b1, w2, b2, gamma, beta))
    refr = _reference(xr, w1, b1, w2, b2, gamma, beta)
    assert outr.shape == (Br, Sr, D)
    assert jnp.allclose(outr, refr, atol=1e-4, rtol=1e-4)

    print("KERNEL_OK")
</pallas_src>

<mosaic_0001>
module attributes {stable_mosaic.version = 11 : i64} {
  func.func @_ffn_ln_kernel(%arg0: i32, %arg1: memref<16x32xf32, #tpu.memory_space<vmem>>, %arg2: memref<32x64xf32, #tpu.memory_space<vmem>>, %arg3: memref<1x64xf32, #tpu.memory_space<vmem>>, %arg4: memref<64x32xf32, #tpu.memory_space<vmem>>, %arg5: memref<1x32xf32, #tpu.memory_space<vmem>>, %arg6: memref<1x32xf32, #tpu.memory_space<vmem>>, %arg7: memref<1x32xf32, #tpu.memory_space<vmem>>, %arg8: memref<16x32xf32, #tpu.memory_space<vmem>>) attributes {dimension_semantics = [#tpu.dimension_semantics<parallel>], iteration_bounds = array<i64: 1>, scalar_prefetch = 0 : i64, scratch_operands = 0 : i64, tpu.core_type = #tpu.core_type<tc>, window_params = [{transform_indices = @transform_0, window_bounds = array<i64: 16, 32>}, {pipeline_mode = #tpu.pipeline_mode<synchronous>, transform_indices = @transform_1, window_bounds = array<i64: 32, 64>}, {pipeline_mode = #tpu.pipeline_mode<synchronous>, transform_indices = @transform_2, window_bounds = array<i64: 1, 64>}, {pipeline_mode = #tpu.pipeline_mode<synchronous>, transform_indices = @transform_3, window_bounds = array<i64: 64, 32>}, {pipeline_mode = #tpu.pipeline_mode<synchronous>, transform_indices = @transform_4, window_bounds = array<i64: 1, 32>}, {pipeline_mode = #tpu.pipeline_mode<synchronous>, transform_indices = @transform_5, window_bounds = array<i64: 1, 32>}, {pipeline_mode = #tpu.pipeline_mode<synchronous>, transform_indices = @transform_6, window_bounds = array<i64: 1, 32>}, {transform_indices = @transform_7, window_bounds = array<i64: 16, 32>}]} {
    %c0 = arith.constant 0 : index
    %c0_0 = arith.constant 0 : index
    %0 = vector.load %arg1[%c0, %c0_0] : memref<16x32xf32, #tpu.memory_space<vmem>>, vector<16x32xf32>
    %c0_1 = arith.constant 0 : index
    %c0_2 = arith.constant 0 : index
    %1 = vector.load %arg2[%c0_1, %c0_2] : memref<32x64xf32, #tpu.memory_space<vmem>>, vector<32x64xf32>
    %cst = arith.constant dense<0.000000e+00> : vector<16x64xf32>
    %2 = tpu.matmul %0, %1, %cst {dimension_numbers = #tpu.dot_dimension_numbers<[1], [0], [0], [1], [0, 0, 1, 1], [], []>} : vector<16x32xf32>, vector<32x64xf32>, vector<16x64xf32> -> vector<16x64xf32>
    %c0_3 = arith.constant 0 : index
    %c0_4 = arith.constant 0 : index
    %3 = vector.load %arg3[%c0_3, %c0_4] : memref<1x64xf32, #tpu.memory_space<vmem>>, vector<1x64xf32>
    %4 = vector.broadcast %3 : vector<1x64xf32> to vector<16x64xf32>
    %5 = arith.addf %2, %4 : vector<16x64xf32>
    %cst_5 = arith.constant 0.000000e+00 : f32
    %6 = vector.broadcast %cst_5 : f32 to vector<16x64xf32>
    %7 = arith.maximumf %5, %6 : vector<16x64xf32>
    %c0_6 = arith.constant 0 : index
    %c0_7 = arith.constant 0 : index
    %8 = vector.load %arg4[%c0_6, %c0_7] : memref<64x32xf32, #tpu.memory_space<vmem>>, vector<64x32xf32>
    %cst_8 = arith.constant dense<0.000000e+00> : vector<16x32xf32>
    %9 = tpu.matmul %7, %8, %cst_8 {dimension_numbers = #tpu.dot_dimension_numbers<[1], [0], [0], [1], [0, 0, 1, 1], [], []>} : vector<16x64xf32>, vector<64x32xf32>, vector<16x32xf32> -> vector<16x32xf32>
    %c0_9 = arith.constant 0 : index
    %c0_10 = arith.constant 0 : index
    %10 = vector.load %arg5[%c0_9, %c0_10] : memref<1x32xf32, #tpu.memory_space<vmem>>, vector<1x32xf32>
    %11 = vector.broadcast %10 : vector<1x32xf32> to vector<16x32xf32>
    %12 = arith.addf %9, %11 : vector<16x32xf32>
    %13 = arith.addf %0, %12 : vector<16x32xf32>
    %cst_11 = arith.constant dense<0.000000e+00> : vector<16xf32>
    %14 = vector.multi_reduction <add>, %13, %cst_11 [1] : vector<16x32xf32> to vector<16xf32>
    %15 = vector.shape_cast %14 : vector<16xf32> to vector<16x1xf32>
    %cst_12 = arith.constant 3.200000e+01 : f32
    %16 = vector.broadcast %cst_12 : f32 to vector<16x1xf32>
    %17 = arith.divf %15, %16 : vector<16x1xf32>
    %18 = vector.broadcast %17 : vector<16x1xf32> to vector<16x32xf32>
    %19 = arith.subf %13, %18 : vector<16x32xf32>
    %20 = arith.mulf %19, %19 : vector<16x32xf32>
    %cst_13 = arith.constant dense<0.000000e+00> : vector<16xf32>
    %21 = vector.multi_reduction <add>, %20, %cst_13 [1] : vector<16x32xf32> to vector<16xf32>
    %22 = vector.shape_cast %21 : vector<16xf32> to vector<16x1xf32>
    %cst_14 = arith.constant 3.200000e+01 : f32
    %23 = vector.broadcast %cst_14 : f32 to vector<16x1xf32>
    %24 = arith.divf %22, %23 : vector<16x1xf32>
    %cst_15 = arith.constant 9.99999974E-6 : f32
    %25 = vector.broadcast %cst_15 : f32 to vector<16x1xf32>
    %26 = arith.addf %24, %25 : vector<16x1xf32>
    %27 = math.rsqrt %26 : vector<16x1xf32>
    %28 = vector.broadcast %27 : vector<16x1xf32> to vector<16x32xf32>
    %29 = arith.mulf %19, %28 : vector<16x32xf32>
    %c0_16 = arith.constant 0 : index
    %c0_17 = arith.constant 0 : index
    %30 = vector.load %arg6[%c0_16, %c0_17] : memref<1x32xf32, #tpu.memory_space<vmem>>, vector<1x32xf32>
    %31 = vector.broadcast %30 : vector<1x32xf32> to vector<16x32xf32>
    %32 = arith.mulf %29, %31 : vector<16x32xf32>
    %c0_18 = arith.constant 0 : index
    %c0_19 = arith.constant 0 : index
    %33 = vector.load %arg7[%c0_18, %c0_19] : memref<1x32xf32, #tpu.memory_space<vmem>>, vector<1x32xf32>
    %34 = vector.broadcast %33 : vector<1x32xf32> to vector<16x32xf32>
    %35 = arith.addf %32, %34 : vector<16x32xf32>
    %c0_20 = arith.constant 0 : index
    %c0_21 = arith.constant 0 : index
    %36 = vector.load %arg8[%c0_20, %c0_21] : memref<16x32xf32, #tpu.memory_space<vmem>>, vector<16x32xf32>
    tpu.vector_store %arg8[%c0_20, %c0_21], %35 {strides = array<i32>} : memref<16x32xf32, #tpu.memory_space<vmem>>, vector<16x32xf32>,
    return
  }
  func.func @transform_0(%arg0: i32) -> (i32, i32) {
    %c0_i32 = arith.constant 0 : i32
    %c0_i32_0 = arith.constant 0 : i32
    return %arg0, %c0_i32 : i32, i32
  }
  func.func @transform_1(%arg0: i32) -> (i32, i32) {
    %c0_i32 = arith.constant 0 : i32
    %c0_i32_0 = arith.constant 0 : i32
    %c0_i32_1 = arith.constant 0 : i32
    return %c0_i32, %c0_i32_0 : i32, i32
  }
  func.func @transform_2(%arg0: i32) -> (i32, i32) {
    %c0_i32 = arith.constant 0 : i32
    %c0_i32_0 = arith.constant 0 : i32
    %c0_i32_1 = arith.constant 0 : i32
    return %c0_i32, %c0_i32_0 : i32, i32
  }
  func.func @transform_3(%arg0: i32) -> (i32, i32) {
    %c0_i32 = arith.constant 0 : i32
    %c0_i32_0 = arith.constant 0 : i32
    %c0_i32_1 = arith.constant 0 : i32
    return %c0_i32, %c0_i32_0 : i32, i32
  }
  func.func @transform_4(%arg0: i32) -> (i32, i32) {
    %c0_i32 = arith.constant 0 : i32
    %c0_i32_0 = arith.constant 0 : i32
    %c0_i32_1 = arith.constant 0 : i32
    return %c0_i32, %c0_i32_0 : i32, i32
  }
  func.func @transform_5(%arg0: i32) -> (i32, i32) {
    %c0_i32 = arith.constant 0 : i32
    %c0_i32_0 = arith.constant 0 : i32
    %c0_i32_1 = arith.constant 0 : i32
    return %c0_i32, %c0_i32_0 : i32, i32
  }
  func.func @transform_6(%arg0: i32) -> (i32, i32) {
    %c0_i32 = arith.constant 0 : i32
    %c0_i32_0 = arith.constant 0 : i32
    %c0_i32_1 = arith.constant 0 : i32
    return %c0_i32, %c0_i32_0 : i32, i32
  }
  func.func @transform_7(%arg0: i32) -> (i32, i32) {
    %c0_i32 = arith.constant 0 : i32
    %c0_i32_0 = arith.constant 0 : i32
    return %arg0, %c0_i32 : i32, i32
  }
}

</mosaic_0001>

<bundles_post_ra>
// kernel: tpu_custom_call.1
= control target key start
LH: loop header
LB: loop body
LE: loop exit
PB: predicated region body
PF: predicated region fallthrough
CT: control target
= control target key end

     0   :  { %vm40_vm0 = vcmask 261120   ;;  %s477_s0 = inlined_call_operand.vmem [shape: f32[16,32], index: 0, kind: input, shape index: {}]   ;;  %s478_s1 = inlined_call_operand.vmem [shape: f32[32,64], index: 1, kind: input, shape index: {}]   ;;  %s479_s2 = inlined_call_operand.vmem [shape: f32[1,64], index: 2, kind: input, shape index: {}]   ;;  %s480_s3 = inlined_call_operand.vmem [shape: f32[64,32], index: 3, kind: input, shape index: {}]   ;;  %s481_s4 = inlined_call_operand.vmem [shape: f32[1,32], index: 4, kind: input, shape index: {}]   ;;  %s482_s5 = inlined_call_operand.vmem [shape: f32[1,32], index: 5, kind: input, shape index: {}]   ;;  %s483_s6 = inlined_call_operand.vmem [shape: f32[1,32], index: 6, kind: input, shape index: {}]   ;;  %s484_s7 = inlined_call_operand.hbm [shape: f32[16,32], index: 7, kind: output, shape index: {}]  }
   0x1   :  { %v32_v0 = vld [vmem:[%s478_s1 + $0x18] sm:$0xff]  ;;  %v31_v1 = vld [vmem:[%s478_s1 + $0x10] sm:$0xff]  ;;  %v27_v2 = vld [vmem:[%s477_s0] sm:$0xff] }
   0x2   :  { %310 = vmatprep.subr.mxu0 %v32_v0  ;;  %v30_v3 = vld [vmem:[%s478_s1 + $0x8] sm:$0xff]  ;;  %318 = vmatprep.mubr.msk.f32.mxu0 %vm40_vm0, %v27_v2  ;;  %v131_v4 = vld [vmem:[%s480_s3 + $0x38] sm:$0xff]  ;;  %v130_v5 = vld [vmem:[%s480_s3 + $0x30] sm:$0xff] }
   0x3   :  { %311 = vmatpush3.msra.mxu0 %v32_v0  ;;  %321 = vmatprep.subr.mxu1 %v131_v4 }
   0x4   :  { %312 = vmatprep.subr.mxu0 %v31_v1 }
   0x5   :  { %12 = vsyncpa [#allocation3], 0  ;;  %313 = vmatpush3.msra.mxu0 %v31_v1  ;;  %v29_v6 = vld [vmem:[%s478_s1] sm:$0xff]  ;;  %322 = vmatpush3.msra.mxu1 %v131_v4  ;;  %v129_v7 = vld [vmem:[%s480_s3 + $0x28] sm:$0xff]  ;;  %vm139_vm1 = vcmask 523264   ;;  %s369_s9 = smov [#allocation2]  }
   0x6   :  { %314 = vmatprep.subr.mxu0 %v30_v3  ;;  %323 = vmatprep.subr.mxu1 %v130_v5  ;;  %v28_v8 = vld [vmem:[%s477_s0 + $0x8] sm:$0xff]  ;;  %v128_v9 = vld [vmem:[%s480_s3 + $0x20] sm:$0xff]  ;;  %v127_v10 = vld [vmem:[%s480_s3 + $0x18] sm:$0xff]  ;;  %s275_s10 = sshll.u32 %s369_s9, 4  ;;  %s276_s10 = int_to_ptr.vmem [resolvable:$true] %s275_s10 }
   0x7   :  { %315 = vmatpush3.msra.mxu0 %v30_v3  ;;  %324 = vmatpush3.msra.mxu1 %v130_v5  ;;  %v126_v11 = vld [vmem:[%s480_s3 + $0x10] sm:$0xff]  ;;  %v125_v12 = vld [vmem:[%s480_s3 + $0x8] sm:$0xff]  ;;  %v124_v13 = vld [vmem:[%s480_s3] sm:$0xff]  ;;  %s347_s11 = scalar_lea.vmem %s276_s10, 256  ;;  %p352_p1 = scmp.lt.s32.totalorder %s276_s10, %s276_s10 }
   0x8   :  { %316 = vmatprep.subr.mxu0 %v29_v6  ;;  %325 = vmatprep.subr.mxu1 %v129_v7  ;;  %v286_v14 = vld [vmem:[%s479_s2] ss:$0 sm:$0xff]  ;;  %p348_p0 = scmp.ne.s32.totalorder %s276_s10, %s347_s11  ;;  %p353_p2 = scmp.lt.s32.totalorder %s347_s11, %s347_s11 }
   0x9   :  { %317 = vmatpush3.msra.mxu0 %v29_v6  ;;  %326 = vmatpush3.msra.mxu1 %v129_v7  ;;  %v289_v22 = vld [vmem:[%s481_s4] ss:$0 sm:$0xff] }
   0xa   :  { %319 = vmatmul.mubr.msk.f32.vlgmr.msra.gmra.mxu0 %vm40_vm0, %v28_v8  ;;  %327 = vmatprep.subr.mxu1 %v128_v9  ;;  %v292_v47 = vld [vmem:[%s482_s5] ss:$0 sm:$0xff]  ;;  %p354_p3 = por %p353_p2, %p352_p1 }
   0xb   :  { %328 = vmatpush3.msra.mxu1 %v128_v9  ;;  %v293_v49 = vld [vmem:[%s483_s6] ss:$0 sm:$0xff] }
   0xc   :  { %329 = vmatprep.subr.mxu1 %v127_v10  ;;  %p355_p4 = pnand %p354_p3, %p348_p0 }
   0xd   :  { %330 = vmatpush3.msra.mxu1 %v127_v10 }
   0xe   :  { %331 = vmatprep.subr.mxu1 %v126_v11 }
   0xf   :  { %332 = vmatpush3.msra.mxu1 %v126_v11 }
  0x10   :  { %333 = vmatprep.subr.mxu1 %v125_v12 }
  0x11   :  { %334 = vmatpush3.msra.mxu1 %v125_v12 }
  0x12   :  { %335 = vmatprep.subr.mxu1 %v124_v13 }
  0x13   :  { %336 = vmatpush3.msra.mxu1 %v124_v13 }
  0xca   :  { %v320_v15 = vpop.f32.mrf.mxu0 }
  0xcb   :  { %v119_v16 = vadd.f32 %v320_v15, %v286_v14 }
  0xcc   :  { %v113_v17 = vpop.f32.mrf.mxu0 }
  0xcd   :  { %v114_v18 = vadd.f32 %v286_v14, %v113_v17  ;;  %v123_v20 = vmax.f32 %v119_v16, 0.0 }
  0xcf   :  { %v122_v19 = vmax.f32 %v114_v18, 0.0 }
  0xd1   :  { %337 = vmatprep.mubr.msk.f32.mxu1 %vm139_vm1, %v122_v19 }
  0xd2   :  { %338 = vmatmul.mubr.msk.f32.vlgmr.msra.gmra.mxu1 %vm139_vm1, %v123_v20 }
 0x192   :  { %v339_v21 = vpop.f32.mrf.mxu1 }
 0x193   :  { %v218_v24 = vadd.f32 %v339_v21, %v289_v22 }
 0x194   :  { %v212_v23 = vpop.f32.mrf.mxu1 }
 0x195   :  { %v213_v25 = vadd.f32 %v289_v22, %v212_v23  ;;  %v222_v28 = vadd.f32 %v218_v24, %v28_v8 }
 0x197   :  { %v221_v26 = vadd.f32 %v213_v25, %v27_v2  ;;  %v226_v29 = vsel %vm40_vm0, %v222_v28, 0.0 }
 0x199   :  { %v223_v27 = vsel %vm40_vm0, %v221_v26, 0.0 }
 0x19a   :  { %224 = vadd.xlane.f32.xlu0 %v223_v27 }
 0x19e   :  { %227 = vadd.xlane.f32.xlu0 %v226_v29 }
 0x223   :  { %v225_v30 = vpop.xlane.xlu0 %224 }
 0x224   :  { %v230_v31 = vmul.f32 0.03125, %v225_v30 }
 0x226   :  { %v232_v32 = vsub.f32 %v221_v26, %v230_v31 }
 0x227   :  { %v228_v33 = vpop.xlane.xlu0 %227 }
 0x228   :  { %v231_v34 = vmul.f32 0.03125, %v228_v33  ;;  %v234_v35 = vmul.f32 %v232_v32, %v232_v32 }
 0x22a   :  { %v233_v36 = vsub.f32 %v222_v28, %v231_v34  ;;  %v236_v37 = vsel %vm40_vm0, %v234_v35, 0.0 }
 0x22b   :  { %237 = vadd.xlane.f32.xlu1 %v236_v37 }
 0x22c   :  { %v235_v38 = vmul.f32 %v233_v36, %v233_v36 }
 0x22e   :  { %v239_v39 = vsel %vm40_vm0, %v235_v38, 0.0 }
 0x22f   :  { %240 = vadd.xlane.f32.xlu1 %v239_v39 }
 0x2b4   :  { %v238_v40 = vpop.xlane.xlu1 %237 }
 0x2b5   :  { %v242_v41 = vmul.f32 0.03125, %v238_v40 }
 0x2b7   :  { %v244_v42 = vadd.f32 1e-05, %v242_v41 }
 0x2b8   :  { %v241_v43 = vpop.xlane.xlu1 %240 }
 0x2b9   :  { %343 = vrsqrt.f32 %v244_v42  ;;  %v243_v44 = vmul.f32 0.03125, %v241_v43 }
 0x2bb   :  { %v245_v45 = vadd.f32 1e-05, %v243_v44 }
 0x2bd   :  { %345 = vrsqrt.f32 %v245_v45 }
 0x2c6   :  { %v344_v46 = vpop.eup %343 }
 0x2c7   :  { %v248_v48 = vmul.f32 %v344_v46, %v232_v32 }
 0x2c9   :  { %v257_v50 = vmul.f32 %v292_v47, %v248_v48 }
 0x2ca   :  { %v346_v51 = vpop.eup %345 }
 0x2cb   :  { %v249_v52 = vmul.f32 %v346_v51, %v233_v36  ;;  %v266_v53 = vadd.f32 %v293_v49, %v257_v50 }
 0x2cd   :  { %v258_v54 = vmul.f32 %v292_v47, %v249_v52  ;;  %268 = vst.msk [vmem:[#allocation2] sm:$0xff] %vm40_vm0, %v266_v53 }
 0x2cf   :  { %v267_v55 = vadd.f32 %v293_v49, %v258_v54 }
 0x2d1   :  { %269 = vst.msk [vmem:[#allocation2 + $0x8] sm:$0xff] %vm40_vm0, %v267_v55 }
 0x2d2   :  { %358 = shalt.err (!%p355_p4)
}
 0x2d3   :  { %s370_s5 = smov 128   ;;  %s371_s6 = smov 8  }
 0x2d4   :  { %281 = dma.vmem_to_hbm [thread:$0]  %s276_s10, 256, %s484_s7, [#allocation3], %s370_s5, %s370_s5, %s371_s6  }
 0x2d5   :  { %367 = dma.done.wait [#allocation3], 256  }
 0x2d6   :  { %368 = vsyncadd [#allocation3], 4294967040 }
 0x2d7   :  { %285 = vsyncpa [#allocation3], 1 }

</bundles_post_ra>
